<compile_context>
chip_gen: v7x
topology: tpu7x:2x2x1
jax: 0.10.0
libtpu: 0.0.40
codegen_flags: <defaults>
</compile_context>

<pallas_src>
import functools
import math

import jax
import jax.numpy as jnp
import numpy as np
from jax.experimental import pallas as pl
from jax.experimental.pallas import tpu as pltpu

LN_EPS = 1e-5


def _layernorm(x, gamma, beta):
    mu = jnp.mean(x, axis=-1, keepdims=True)
    var = jnp.mean((x - mu) ** 2, axis=-1, keepdims=True)
    return (x - mu) * jax.lax.rsqrt(var + LN_EPS) * gamma + beta


# ---------------------------------------------------------------------------
# Kernel 1: embedding + positional encoding (runs once, per-batch grid).
# ---------------------------------------------------------------------------
def embed_pe_kernel(x_ref, w_ref, b_ref, pe_ref, o_ref):
    o_ref[...] = (jnp.dot(x_ref[...].astype(w_ref.dtype), w_ref[...],
                          preferred_element_type=jnp.float32)
                  + b_ref[...] + pe_ref[...])


# ---------------------------------------------------------------------------
# Kernel 2: all encoder layers fused.  grid = (B, NUM_LAYERS):
#   batch axis "parallel" (megacore-shardable), layer axis "arbitrary".
# The running activation is the VMEM-resident output block across layers.
# ---------------------------------------------------------------------------
def fused_layers_kernel(h0_ref, wqkv_ref, bqkv_ref, woh_ref, bo_ref,
                        g1_ref, be1_ref, w1_ref, b1_ref,
                        w2_ref, b2_ref, g2_ref, be2_ref,
                        out_ref, attn_ref, *, num_heads):
    layer = pl.program_id(1)
    n_layers = pl.num_programs(1)

    L, D = out_ref.shape
    H = num_heads
    hd = D // H
    scale = 1.0 / math.sqrt(hd)
    cdt = wqkv_ref.dtype          # matmul operand dtype (f32 here; bf16-able)

    # Layer 0: seed the resident activation block with the embedding output.
    @pl.when(layer == 0)
    def _():
        out_ref[...] = h0_ref[...]

    h = out_ref[...]                                             # (L, D) f32

    # ---- QKV projection ------------------------------------------------------
    # Per-head-packed weights (3H, D, hd): the batched matmul produces the
    # head-split layout straight from the MXU — no lane slicing / stack /
    # transpose relayouts.
    hb = jnp.broadcast_to(h.astype(cdt)[None], (3 * H, L, D))
    qkv = jnp.einsum('gld,gdn->gln', hb, wqkv_ref[...],
                     preferred_element_type=jnp.float32) + bqkv_ref[...]
    q = qkv[0 * H:1 * H]       # (H, L, hd) — leading-dim slices, no relayout
    k = qkv[1 * H:2 * H]
    v = qkv[2 * H:3 * H]

    # ---- attention (all heads in one batched einsum per stage) ---------------
    s = jnp.einsum('hqd,hkd->hqk', q.astype(cdt), k.astype(cdt),
                   preferred_element_type=jnp.float32) * scale   # (H, L, L)
    s = s - jnp.max(s, axis=-1, keepdims=True)
    e = jnp.exp(s)
    denom = jnp.sum(e, axis=-1, keepdims=True)
    # EUP approximate reciprocal + one Newton step: divide stays off the VALU,
    # accuracy stays at f32 level for the reference check.
    r = pl.reciprocal(denom, approx=True)
    r = r * (2.0 - denom * r)
    p = e * r                                                    # (H, L, L)

    # Only the last layer's attention is consumed -> single store, last layer.
    # TODO(synk): for L < 128 this store lowers to masked sub-128-lane vst; a
    # lane-dense repack would need an (H,L,L)->(H*L*L/128,128) in-kernel
    # reshape that Mosaic does not lower reliably at these shapes.  For
    # realistic L >= 128 the store is already lane-dense.
    @pl.when(layer == n_layers - 1)
    def _():
        attn_ref[...] = p

    o = jnp.einsum('hqk,hkd->hqd', p.astype(cdt), v.astype(cdt),
                   preferred_element_type=jnp.float32)           # (H, L, hd)

    # ---- output projection ---------------------------------------------------
    # Per-head (L,hd)@(hd,D) dots accumulated into one (L, D) f32 value:
    # equals concat(heads) @ Wo with no lane concatenation and no (H, L, D)
    # intermediate.  (A multi-contracting-dim dot 'hld,hdk->lk' would fuse the
    # head sum into the MXU accumulator but is not reliably lowered by Mosaic.)
    x1 = jnp.dot(o[0].astype(cdt), woh_ref[0],
                 preferred_element_type=jnp.float32)
    for hh in range(1, H):
        x1 = x1 + jnp.dot(o[hh].astype(cdt), woh_ref[hh],
                          preferred_element_type=jnp.float32)
    x1 = x1 + bo_ref[...]                                        # (L, D)

    # ---- residual + norm1 ----------------------------------------------------
    h1 = _layernorm(h + x1, g1_ref[...], be1_ref[...])

    # ---- feed-forward (Linear -> ReLU -> Linear) -------------------------------
    f = jnp.dot(h1.astype(cdt), w1_ref[...],
                preferred_element_type=jnp.float32) + b1_ref[...]
    f = jnp.maximum(f, 0.0)
    f = jnp.dot(f.astype(cdt), w2_ref[...],
                preferred_element_type=jnp.float32) + b2_ref[...]

    # ---- residual + norm2  -> becomes `h` for the next layer step --------------
    out_ref[...] = _layernorm(h1 + f, g2_ref[...], be2_ref[...])


# ---------------------------------------------------------------------------
# Wrapper
# ---------------------------------------------------------------------------
def encoder_forward_pallas(x, params, num_heads, weight_dtype=jnp.float32):
    B, L, E = x.shape
    D = params["emb_w"].shape[1]
    H = num_heads
    hd = D // H
    layers = params["layers"]
    NL = len(layers)
    wd = weight_dtype

    def per_head(w):                       # (D, D) -> (H, D, hd), head-major cols
        return w.reshape(D, H, hd).transpose(1, 0, 2)

    # Host-side one-time packing, stacked along a leading layer axis.
    wqkv = jnp.stack([jnp.concatenate([per_head(lp["wq"]), per_head(lp["wk"]),
                                       per_head(lp["wv"])], axis=0)
                      for lp in layers]).astype(wd)              # (NL, 3H, D, hd)
    bqkv = jnp.stack([jnp.concatenate([lp["bq"].reshape(H, 1, hd),
                                       lp["bk"].reshape(H, 1, hd),
                                       lp["bv"].reshape(H, 1, hd)], axis=0)
                      for lp in layers])                         # (NL, 3H, 1, hd)
    woh = jnp.stack([lp["wo"].reshape(H, hd, D)
                     for lp in layers]).astype(wd)               # (NL, H, hd, D)
    bo = jnp.stack([lp["bo"] for lp in layers])                  # (NL, 1, D)
    g1 = jnp.stack([lp["g1"] for lp in layers])
    be1 = jnp.stack([lp["be1"] for lp in layers])
    w1 = jnp.stack([lp["w1"] for lp in layers]).astype(wd)
    b1 = jnp.stack([lp["b1"] for lp in layers])
    w2 = jnp.stack([lp["w2"] for lp in layers]).astype(wd)
    b2 = jnp.stack([lp["b2"] for lp in layers])
    g2 = jnp.stack([lp["g2"] for lp in layers])
    be2 = jnp.stack([lp["be2"] for lp in layers])

    # --- stage 1: embedding + positional encoding -----------------------------
    h0 = pl.pallas_call(
        embed_pe_kernel,
        out_shape=jax.ShapeDtypeStruct((B, L, D), jnp.float32),
        grid=(B,),
        in_specs=[pl.BlockSpec((None, L, E), lambda b: (b, 0, 0)),
                  pl.BlockSpec((E, D), lambda b: (0, 0)),
                  pl.BlockSpec((1, D), lambda b: (0, 0)),
                  pl.BlockSpec((L, D), lambda b: (0, 0))],
        out_specs=pl.BlockSpec((None, L, D), lambda b: (b, 0, 0)),
        compiler_params=pltpu.CompilerParams(
            dimension_semantics=("parallel",)),
    )(x, params["emb_w"].astype(wd), params["emb_b"], params["pe"])

    # --- stage 2: all encoder layers, one fused call ---------------------------
    def act_spec():        # per-batch activation block, resident across layers
        return pl.BlockSpec((None, L, D), lambda b, l: (b, 0, 0))

    def layer_spec(a):     # per-layer slice along the leading layer axis
        nd = a.ndim
        return pl.BlockSpec((None,) + tuple(a.shape[1:]),
                            lambda b, l: (l,) + (0,) * (nd - 1))

    kernel = functools.partial(fused_layers_kernel, num_heads=H)
    out, attn = pl.pallas_call(
        kernel,
        out_shape=(jax.ShapeDtypeStruct((B, L, D), jnp.float32),
                   jax.ShapeDtypeStruct((B, H, L, L), jnp.float32)),
        grid=(B, NL),
        in_specs=[act_spec(),
                  layer_spec(wqkv), layer_spec(bqkv), layer_spec(woh),
                  layer_spec(bo), layer_spec(g1), layer_spec(be1),
                  layer_spec(w1), layer_spec(b1), layer_spec(w2),
                  layer_spec(b2), layer_spec(g2), layer_spec(be2)],
        out_specs=(act_spec(),
                   pl.BlockSpec((None, H, L, L), lambda b, l: (b, 0, 0, 0))),
        compiler_params=pltpu.CompilerParams(
            dimension_semantics=("parallel", "arbitrary"),
            vmem_limit_bytes=32 * 1024 * 1024),
    )(h0, wqkv, bqkv, woh, bo, g1, be1, w1, b1, w2, b2, g2, be2)

    return out, attn


# ---------------------------------------------------------------------------
# Pure-JAX reference (mirrors the PyTorch forward semantics)
# ---------------------------------------------------------------------------
def encoder_forward_ref(x, params, num_heads):
    def ln(z, g, b):
        mu = jnp.mean(z, axis=-1, keepdims=True)
        var = jnp.mean((z - mu) ** 2, axis=-1, keepdims=True)
        return (z - mu) / jnp.sqrt(var + LN_EPS) * g + b

    h = x @ params["emb_w"] + params["emb_b"] + params["pe"]
    attn = None
    for lp in params["layers"]:
        B, L, D = h.shape
        H = num_heads
        hd = D // H
        q = (h @ lp["wq"] + lp["bq"]).reshape(B, L, H, hd).transpose(0, 2, 1, 3)
        k = (h @ lp["wk"] + lp["bk"]).reshape(B, L, H, hd).transpose(0, 2, 1, 3)
        v = (h @ lp["wv"] + lp["bv"]).reshape(B, L, H, hd).transpose(0, 2, 1, 3)
        s = jnp.einsum("bhqd,bhkd->bhqk", q, k) / math.sqrt(hd)
        attn = jax.nn.softmax(s, axis=-1)
        o = jnp.einsum("bhqk,bhkd->bhqd", attn, v).transpose(0, 2, 1, 3).reshape(B, L, D)
        x1 = o @ lp["wo"] + lp["bo"]
        h1 = ln(h + x1, lp["g1"], lp["be1"])
        f = jnp.maximum(h1 @ lp["w1"] + lp["b1"], 0.0) @ lp["w2"] + lp["b2"]
        h = ln(h1 + f, lp["g2"], lp["be2"])
    return h, attn


# ---------------------------------------------------------------------------
# Parameter construction (deterministic, synthetic)
# ---------------------------------------------------------------------------
def make_params(key, embedding_dim, d_model, length, num_layers):
    keys = jax.random.split(key, 2 + num_layers)

    def rnd(k, shape, scale=0.1):
        return scale * jax.random.normal(k, shape, dtype=jnp.float32)

    pos = jnp.arange(length, dtype=jnp.float32)[:, None]
    i = jnp.arange(0, d_model, 2, dtype=jnp.float32)
    div = jnp.exp(-jnp.log(10000.0) * i / d_model)
    pe = jnp.zeros((length, d_model), dtype=jnp.float32)
    pe = pe.at[:, 0::2].set(jnp.sin(pos * div))
    pe = pe.at[:, 1::2].set(jnp.cos(pos * div))

    params = {
        "emb_w": rnd(keys[0], (embedding_dim, d_model)),
        "emb_b": rnd(keys[1], (1, d_model)),
        "pe": pe,
        "layers": [],
    }
    for l in range(num_layers):
        ks = jax.random.split(keys[2 + l], 12)
        lp = {
            "wq": rnd(ks[0], (d_model, d_model)), "bq": rnd(ks[1], (1, d_model)),
            "wk": rnd(ks[2], (d_model, d_model)), "bk": rnd(ks[3], (1, d_model)),
            "wv": rnd(ks[4], (d_model, d_model)), "bv": rnd(ks[5], (1, d_model)),
            "wo": rnd(ks[6], (d_model, d_model)), "bo": rnd(ks[7], (1, d_model)),
            "g1": jnp.ones((1, d_model), jnp.float32),
            "be1": jnp.zeros((1, d_model), jnp.float32),
            "w1": rnd(ks[8], (d_model, d_model)), "b1": rnd(ks[9], (1, d_model)),
            "w2": rnd(ks[10], (d_model, d_model)), "b2": rnd(ks[11], (1, d_model)),
            "g2": jnp.ones((1, d_model), jnp.float32),
            "be2": jnp.zeros((1, d_model), jnp.float32),
        }
        params["layers"].append(lp)
    return params


# ---------------------------------------------------------------------------
if __name__ == "__main__":
    B, L, E = 2, 8, 16           # batch, sequence length, embedding_dim
    D, H, NUM_LAYERS = 32, 4, 2  # d_model, num_heads, num_layers

    key = jax.random.PRNGKey(0)
    kx, kp = jax.random.split(key)
    x = jax.random.normal(kx, (B, L, E), dtype=jnp.float32)
    params = make_params(kp, E, D, L, NUM_LAYERS)

    # f32 weights so the check against the f32 reference is tight; on v6e/v7x
    # pass weight_dtype=jnp.bfloat16 for the MXU-native path.
    out, attn = encoder_forward_pallas(x, params, H, weight_dtype=jnp.float32)
    out = jax.block_until_ready(out)
    attn = jax.block_until_ready(attn)

    ref_out, ref_attn = encoder_forward_ref(x, params, H)
    # Tolerance leaves headroom for the EUP approx-reciprocal (+1 NR step)
    # softmax normalization.
    np.testing.assert_allclose(np.asarray(out), np.asarray(ref_out),
                               rtol=5e-4, atol=5e-4)
    np.testing.assert_allclose(np.asarray(attn), np.asarray(ref_attn),
                               rtol=5e-4, atol=5e-4)

    print("KERNEL_OK")
</pallas_src>

<mosaic_0001>
module attributes {stable_mosaic.version = 11 : i64} {
  func.func @embed_pe_kernel(%arg0: i32, %arg1: memref<1x8x16xf32, #tpu.memory_space<vmem>>, %arg2: memref<16x32xf32, #tpu.memory_space<vmem>>, %arg3: memref<1x32xf32, #tpu.memory_space<vmem>>, %arg4: memref<8x32xf32, #tpu.memory_space<vmem>>, %arg5: memref<1x8x32xf32, #tpu.memory_space<vmem>>) attributes {dimension_semantics = [#tpu.dimension_semantics<parallel>], iteration_bounds = array<i64: 2>, scalar_prefetch = 0 : i64, scratch_operands = 0 : i64, tpu.core_type = #tpu.core_type<tc>, window_params = [{transform_indices = @transform_0, window_bounds = array<i64: 1, 8, 16>}, {pipeline_mode = #tpu.pipeline_mode<synchronous>, transform_indices = @transform_1, window_bounds = array<i64: 16, 32>}, {pipeline_mode = #tpu.pipeline_mode<synchronous>, transform_indices = @transform_2, window_bounds = array<i64: 1, 32>}, {pipeline_mode = #tpu.pipeline_mode<synchronous>, transform_indices = @transform_3, window_bounds = array<i64: 8, 32>}, {transform_indices = @transform_4, window_bounds = array<i64: 1, 8, 32>}]} {
    %c0 = arith.constant 0 : index
    %c0_0 = arith.constant 0 : index
    %c0_1 = arith.constant 0 : index
    %0 = vector.load %arg1[%c0, %c0_0, %c0_1] : memref<1x8x16xf32, #tpu.memory_space<vmem>>, vector<1x8x16xf32>
    %1 = vector.shape_cast %0 : vector<1x8x16xf32> to vector<8x16xf32>
    %c0_2 = arith.constant 0 : index
    %c0_3 = arith.constant 0 : index
    %2 = vector.load %arg2[%c0_2, %c0_3] : memref<16x32xf32, #tpu.memory_space<vmem>>, vector<16x32xf32>
    %cst = arith.constant dense<0.000000e+00> : vector<8x32xf32>
    %3 = tpu.matmul %1, %2, %cst {dimension_numbers = #tpu.dot_dimension_numbers<[1], [0], [0], [1], [0, 0, 1, 1], [], []>} : vector<8x16xf32>, vector<16x32xf32>, vector<8x32xf32> -> vector<8x32xf32>
    %c0_4 = arith.constant 0 : index
    %c0_5 = arith.constant 0 : index
    %4 = vector.load %arg3[%c0_4, %c0_5] : memref<1x32xf32, #tpu.memory_space<vmem>>, vector<1x32xf32>
    %5 = vector.broadcast %4 : vector<1x32xf32> to vector<8x32xf32>
    %6 = arith.addf %3, %5 : vector<8x32xf32>
    %c0_6 = arith.constant 0 : index
    %c0_7 = arith.constant 0 : index
    %7 = vector.load %arg4[%c0_6, %c0_7] : memref<8x32xf32, #tpu.memory_space<vmem>>, vector<8x32xf32>
    %8 = arith.addf %6, %7 : vector<8x32xf32>
    %c0_8 = arith.constant 0 : index
    %c0_9 = arith.constant 0 : index
    %c0_10 = arith.constant 0 : index
    %9 = vector.load %arg5[%c0_8, %c0_9, %c0_10] : memref<1x8x32xf32, #tpu.memory_space<vmem>>, vector<1x8x32xf32>
    %10 = vector.shape_cast %9 : vector<1x8x32xf32> to vector<8x32xf32>
    %11 = vector.shape_cast %8 : vector<8x32xf32> to vector<1x8x32xf32>
    tpu.vector_store %arg5[%c0_8, %c0_9, %c0_10], %11 {strides = array<i32>} : memref<1x8x32xf32, #tpu.memory_space<vmem>>, vector<1x8x32xf32>,
    return
  }
  func.func @transform_0(%arg0: i32) -> (i32, i32, i32) {
    %c0_i32 = arith.constant 0 : i32
    %c0_i32_0 = arith.constant 0 : i32
    %c0_i32_1 = arith.constant 0 : i32
    return %arg0, %c0_i32, %c0_i32_0 : i32, i32, i32
  }
  func.func @transform_1(%arg0: i32) -> (i32, i32) {
    %c0_i32 = arith.constant 0 : i32
    %c0_i32_0 = arith.constant 0 : i32
    %c0_i32_1 = arith.constant 0 : i32
    return %c0_i32, %c0_i32_0 : i32, i32
  }
  func.func @transform_2(%arg0: i32) -> (i32, i32) {
    %c0_i32 = arith.constant 0 : i32
    %c0_i32_0 = arith.constant 0 : i32
    %c0_i32_1 = arith.constant 0 : i32
    return %c0_i32, %c0_i32_0 : i32, i32
  }
  func.func @transform_3(%arg0: i32) -> (i32, i32) {
    %c0_i32 = arith.constant 0 : i32
    %c0_i32_0 = arith.constant 0 : i32
    %c0_i32_1 = arith.constant 0 : i32
    return %c0_i32, %c0_i32_0 : i32, i32
  }
  func.func @transform_4(%arg0: i32) -> (i32, i32, i32) {
    %c0_i32 = arith.constant 0 : i32
    %c0_i32_0 = arith.constant 0 : i32
    %c0_i32_1 = arith.constant 0 : i32
    return %arg0, %c0_i32, %c0_i32_0 : i32, i32, i32
  }
}

</mosaic_0001>

<bundles_post_ra>
// kernel: tpu_custom_call.1
= control target key start
LH: loop header
LB: loop body
LE: loop exit
PB: predicated region body
PF: predicated region fallthrough
CT: control target
= control target key end

     0   :  { %9 = vsyncpa [#allocation3], 0  ;;  %s866_s0 = inlined_call_operand.hbm [shape: f32[2,8,16], index: 0, kind: input, shape index: {}]   ;;  %s867_s1 = inlined_call_operand.hbm [shape: f32[16,32], index: 1, kind: input, shape index: {}]   ;;  %s868_s2 = inlined_call_operand.vmem [shape: f32[1,32], index: 2, kind: input, shape index: {}]   ;;  %s869_s3 = inlined_call_operand.vmem [shape: f32[8,32], index: 3, kind: input, shape index: {}]   ;;  %s870_s4 = inlined_call_operand.hbm [shape: f32[2,8,32], index: 4, kind: output, shape index: {}]  }
   0x1   :  { %11 = vsyncpa [#allocation3 + $0x1], 0 }
   0x2   :  { %12 = vsyncpa [#allocation6], 0 }
   0x3   :  { %13 = vsyncpa [#allocation4], 0 }
   0x4   :  { %15 = vsyncpa [#allocation4 + $0x1], 0  ;;  %s664_s15 = smov 0   ;;  %s666_s16 = smov 0  }
   0x5   :  { %s668_s17 = smov 0   ;;  %s670_s18 = smov 0  }
   0x6 LB: > { %s685_s19 = sadd.s32 4294967295, %s629_s18   ;;  %s410_s20 = sadd.s32 4294967294, %s629_s18   ;;  %s629_s18 = sphi %s670_s18, %s890_s18   ;;  %s625_s17 = sphi %s668_s17, %s889_s17   ;;  %s621_s16 = sphi %s666_s16, %s888_s16   ;;  %s617_s15 = sphi %s664_s15, %s887_s15  }
   0x7   : > { %p41_p0 = scmp.ne.s32.totalorder %s621_s16, %s617_s15  ;;  %p871_p1 = scmp.eq.s32.totalorder %s685_s19, 0 }
   0x8   : > { %p134_p3 = scmp.eq.s32.totalorder %s410_s20, 1  ;;  %p411_p5 = scmp.ge.s32.totalorder %s629_s18, 1 }
   0x9   : > { %p694_p4 = por %p871_p1, %p41_p0  ;;  %p141_p7 = scmp.lt.s32.totalorder %s629_s18, 3 }
   0xa   : > { %p699_p6 = por %p134_p3, %p41_p0  ;;  %s631_s24 = smov [#allocation5]  }
   0xb   : > { %s874_s21 = scalar_select %p694_p4, 1, 0 }
   0xc   : > { %s875_s22 = scalar_select %p699_p6, 1, 0 }
   0xd   : > { %p704_p8 = pnand %p411_p5, %p141_p7  ;;  %s153_s25 = sshll.u32 %s631_s24, 4  ;;  %s708_s25 = int_to_ptr.vmem [resolvable:$true] %s153_s25 }
   0xe   : > { %s720_s27 = sadd.s32 1, %s629_s18   ;;  %s28_s28 = sadd.s32 1, %s625_s17 }
   0xf   : > { %s876_s23 = scalar_select %p704_p8, 1, 0 }
  0x10   : > { %p447_p9 = pneg %p704_p8  ;;  %s25_s29 = ssub.s32 %s629_s18, %s720_s27 }
  0x11   : > { %s501_s6 = scalar_lea.hbm %s867_s1, 256 }
  0x12   : > { %p715_p11 = pnand %p447_p9, %p871_p1  ;;  %p502_p12 = scmp.ne.s32.totalorder %s867_s1, %s501_s6 }
  0x13   : > { %p508_p5 = scmp.lt.u32.totalorder %s501_s6, %s867_s1 }
  0x14   : > { %p503_p13 = pneg %p715_p11 }
  0x16   : > { %p504_p0 = pnand %p503_p13, %p502_p12 }
  0x18   : > { %p505_p3 = pneg %p504_p0 }
  0x1a   : > { %p510_p7 = pnand %p508_p5, %p505_p3 }
  0x1c   : > { %513 = shalt.err (!%p510_p7)
}
  0x1d   : > { %s514_s11 = scalar_lea.vmem %s708_s25, 256  ;;  %p522_p2 = scmp.lt.s32.totalorder %s708_s25, %s708_s25 }
  0x1e   : > { %p515_p9 = scmp.ne.s32.totalorder %s708_s25, %s514_s11  ;;  %p523_p6 = scmp.lt.s32.totalorder %s514_s11, %s514_s11 }
  0x20   : > { %p517_p10 = pnand %p515_p9, %p503_p13  ;;  %p524_p4 = por %p523_p6, %p522_p2 }
  0x22   : > { %p518_p1 = pneg %p517_p10 }
  0x24   : > { %p525_p8 = pnand %p524_p4, %p518_p1 }
  0x26   : > { %528 = shalt.err (!%p525_p8)
}
  0x27   : > { %s632_s12 = smov 128   ;;  %s633_s13 = smov 8  }
  0x28   : > { %450 = dma.hbm_to_vmem [thread:$0]  (!%p715_p11), %s867_s1, 256, %s708_s25, [#allocation6], %s632_s12, %s632_s12, %s633_s13  }
  0x29   : > { %p26_p2 = scmp.eq.s32.totalorder %s25_s29, 0  ;;  %p35_p1 = scmp.ne.s32.totalorder %s625_s17, %s621_s16 }
  0x2a   : > { %p36_p4 = scmp.eq.s32.totalorder %s629_s18, 0  ;;  %p460_p6 = scmp.lt.s32.totalorder %s629_s18, 2 }
  0x2b   : > { %s751_s24 = scalar_select %p26_p2, %s625_s17, %s28_s28  }
  0x2c   : > { %p37_p8 = por %p36_p4, %p35_p1  ;;  %p878_p10 = scmp.eq.s32.totalorder %s685_s19, 1 }
  0x2d   : > { %s173_s5 = sand.u32 1, %s625_s17   ;;  %s415_s6 = sshll.u32 %s629_s18, 7 }
  0x2e   : > { %p755_p12 = por %p878_p10, %p35_p1  ;;  %s414_s7 = sshll.u32 %s173_s5, 3 }
  0x2f   : > { %s764_s9 = scalar_lea.hbm %s866_s0, %s415_s6  ;;  %s177_s25 = scalar_lea.vmem [#allocation2], %s414_s7 }
  0x30   : > { %s184_s28 = sshll.u32 %s177_s25, 4  ;;  %p766_p11 = pnand %p460_p6, %p37_p8  ;;  %s770_s28 = int_to_ptr.vmem [resolvable:$true] %s184_s28 }
  0x31   : > { %s174_s10 = scalar_lea.sflag [#allocation3], %s173_s5  ;;  %s529_s11 = scalar_lea.hbm %s764_s9, 128 }
  0x32   : > { %p530_p13 = scmp.ne.s32.totalorder %s764_s9, %s529_s11  ;;  %p531_p0 = pneg %p766_p11 }
  0x33   : > { %s534_s14 = scalar_lea.hbm %s866_s0, 256  ;;  %p535_p7 = scmp.lt.u32.totalorder %s764_s9, %s866_s0 }
  0x34   : > { %p532_p3 = pnand %p531_p0, %p530_p13  ;;  %p536_p9 = scmp.lt.u32.totalorder %s534_s14, %s529_s11 }
  0x35   : > { %p538_p1 = scmp.lt.u32.totalorder %s529_s11, %s764_s9 }
  0x36   : > { %p533_p5 = pneg %p532_p3  ;;  %p537_p2 = por %p536_p9, %p535_p7 }
  0x38   : > { %p539_p4 = por %p538_p1, %p537_p2 }
  0x3a   : > { %p540_p6 = pnand %p539_p4, %p533_p5 }
  0x3c   : > { %543 = shalt.err (!%p540_p6)
}
  0x3d   : > { %s544_s5 = scalar_lea.vmem %s770_s28, 128  ;;  %s634_s7 = smov [#allocation2]  }
  0x3e   : > { %p545_p8 = scmp.ne.s32.totalorder %s770_s28, %s544_s5  ;;  %s549_s26 = sshll.u32 %s634_s7, 4  ;;  %s550_s26 = int_to_ptr.vmem [resolvable:$false] %s549_s26 }
  0x3f   : > { %s551_s8 = scalar_lea.vmem %s550_s26, 256  ;;  %p552_p3 = scmp.lt.s32.totalorder %s770_s28, %s550_s26 }
  0x40   : > { %p547_p10 = pnand %p545_p8, %p531_p0  ;;  %p553_p7 = scmp.lt.s32.totalorder %s551_s8, %s544_s5 }
  0x42   : > { %p548_p13 = pneg %p547_p10  ;;  %p554_p9 = por %p553_p7, %p552_p3 }
  0x44   : > { %p555_p2 = pnand %p554_p9, %p548_p13 }
  0x46   : > { %558 = shalt.err (!%p555_p2)
}
  0x47   : > { %454 = dma.hbm_to_vmem [thread:$0]  (!%p766_p11), %s764_s9, 128, %s770_s28, %s174_s10  }
  0x48   : > { %p881_p5 = scmp.ne.s32.totalorder %s876_s23, 0 }
  0x49   : > { %s800_s25 = sand.u32 (!%p881_p5), 1, %s621_s16   ;;  %p882_p0 = scmp.ne.s32.totalorder (!%p881_p5), %s874_s21, 0 }
  0x4a   : > { %193 = sbr.rel (%p881_p5) target bundleno = 321 (0x141), region = 36  ;;  %s417_s11 = sshll.u32 (!%p881_p5), %s800_s25, 3 }
  0x4b   : > { %s196_s12 = scalar_lea.sflag (!%p881_p5), [#allocation3], %s800_s25  ;;  %s199_s13 = scalar_lea.vmem (!%p881_p5), [#allocation2], %s417_s11 }
  0x51   : > { %604 = dma.done.wait (%p882_p0), %s196_s12, 128  }
  0x52   : > { %606 = vsyncadd (%p882_p0), %s196_s12, 4294967168  ;;  %p883_p1 = scmp.eq.s32.totalorder %s685_s19, 0 }
  0x54   : > { %608 = dma.done.wait (%p883_p1), [#allocation6], 256   ;;  %p884_p11 = pmov %p883_p1 }
  0x55   : > { %v635_v0 = vmov 0.0|0.0   ;;  %vm636_vm0 = vmmov 0   ;;  %v637_v1 = vmov 0.0   ;;  %v229_v2 = vld [vmem:[#allocation5] sm:$0xff]  ;;  %v230_v3 = vld [vmem:[#allocation5 + $0x8] sm:$0xff]  ;;  %v228_v5 = vld [vmem:[%s199_s13] sm:$0xff] }
  0x56   : > { %610 = vsyncadd (%p884_p11), [#allocation6], 4294967040  ;;  %436 = vmatprep.subr.bf16.mxu0 %v635_v0  ;;  %433 = vmatprep.mubr.msk.f32.mxu0 %vm636_vm0, %v637_v1  ;;  %v437_v4 = vpack.c.bf16 %v230_v3, %v229_v2  ;;  %vm238_vm1 = vcmask 130048   ;;  %v420_v6 = vld [vmem:[%s868_s2] ss:$0 sm:$0xff]  ;;  %s423_s29 = sshll.u32 %s685_s19, 7 }
  0x57   : > { %v312_v8 = vld [vmem:[%s869_s3] sm:$0xff]  ;;  %s227_s10 = scalar_lea.vmem [#allocation7], %s417_s11  ;;  %vm314_vm2 = vcmask 261120   ;;  %s822_s5 = scalar_lea.hbm %s870_s4, %s423_s29 }
  0x58   : > { %438 = vmatpush3.bf16.msra.mxu0 %v437_v4  ;;  %s330_s14 = sshll.u32 %s227_s10, 4  ;;  %s317_s7 = scalar_lea.sflag [#allocation4], %s800_s25  ;;  %s824_s14 = int_to_ptr.vmem [resolvable:$true] %s330_s14 }
  0x59   : > { %s559_s26 = scalar_lea.vmem %s824_s14, 128  ;;  %s638_s19 = smov [#allocation7]  }
  0x5a   : > { %p560_p4 = scmp.ne.s32.totalorder %s824_s14, %s559_s26  ;;  %s563_s8 = sshll.u32 %s638_s19, 4  ;;  %s564_s8 = int_to_ptr.vmem [resolvable:$false] %s563_s8 }
  0x5b   : > { %434 = vmatmul.mubr.msk.f32.vlgmr.msra.gmra.mrb[0].mxu0 %vm238_vm1, %v228_v5  ;;  %s565_s11 = scalar_lea.vmem %s564_s8, 256  ;;  %p566_p10 = scmp.lt.s32.totalorder %s824_s14, %s564_s8 }
  0x5c   : > { %p561_p6 = pnand %p560_p4, %p755_p12  ;;  %p567_p13 = scmp.lt.s32.totalorder %s565_s11, %s559_s26 }
  0x5e   : > { %p562_p8 = pneg %p561_p6  ;;  %p568_p3 = por %p567_p13, %p566_p10 }
  0x60   : > { %p569_p7 = pnand %p568_p3, %p562_p8 }
 0x12e   : > { %v308_v7 = vpop.f32.mrb[0].mxu0 }
 0x12f   : > { %v309_v9 = vadd.f32 %v420_v6, %v308_v7  ;;  %v435_v10 = vpop.f32.mrb[1].mxu0 }
 0x131   : > { %v313_v11 = vadd.f32 %v312_v8, %v309_v9 }
 0x133   : > { %315 = vst.msk [vmem:[%s227_s10] sm:$0xff] %vm314_vm2, %v313_v11 }
 0x134   : > { %572 = shalt.err (!%p569_p7)
}
 0x135   : > { %s573_s25 = scalar_lea.hbm %s822_s5, 128  ;;  %s577_s21 = scalar_lea.hbm %s870_s4, 256 }
 0x136   : > { %p574_p9 = scmp.ne.s32.totalorder %s822_s5, %s573_s25  ;;  %p578_p0 = scmp.lt.u32.totalorder %s822_s5, %s870_s4 }
 0x137   : > { %p579_p1 = scmp.lt.u32.totalorder %s577_s21, %s573_s25  ;;  %p581_p4 = scmp.lt.u32.totalorder %s573_s25, %s822_s5 }
 0x138   : > { %p575_p2 = pnand %p574_p9, %p755_p12 }
 0x139   : > { %p580_p11 = por %p579_p1, %p578_p0 }
 0x13a   : > { %p576_p5 = pneg %p575_p2 }
 0x13b   : > { %p582_p6 = por %p581_p4, %p580_p11 }
 0x13d   : > { %p583_p8 = pnand %p582_p6, %p576_p5 }
 0x13f   : > { %586 = shalt.err (!%p583_p8)
}
 0x140   : > { %445 = dma.vmem_to_hbm [thread:$0]  (%p755_p12), %s824_s14, 128, %s822_s5, %s317_s7  }
 0x141 PF: > { %s342_s28 = sand.u32 1, %s617_s15   ;;  %p885_p10 = scmp.ne.s32.totalorder %s875_s22, 0 }
 0x142   : > { %p886_p13 = scmp.ge.s32.totalorder %s629_s18, 2  ;;  %s343_s29 = scalar_lea.sflag [#allocation4], %s342_s28 }
 0x144   : > { %p456_p3 = pnand %p886_p13, %p885_p10 }
 0x146   : > { %612 = dma.done.wait (!%p456_p3), %s343_s29, 128  }
 0x147   : > { %614 = vsyncadd (!%p456_p3), %s343_s29, 4294967168  ;;  %p18_p7 = scmp.ge.s32.totalorder %s720_s27, 4   ;;  %s887_s15 = smov %s621_s16 }
 0x148   : > { %s888_s16 = smov %s625_s17  ;;  %s889_s17 = smov %s751_s24 }
 0x149   : > { %s890_s18 = smov %s720_s27  ;;  %20 = sbr.rel (!%p18_p7) target bundleno = 6 (0x6), region = 85 }
 0x150   :  { %348 = vsyncpa [#allocation3], 1 }
 0x151   :  { %350 = vsyncpa [#allocation3 + $0x1], 1 }
 0x152   :  { %351 = vsyncpa [#allocation6], 1 }
 0x153   :  { %352 = vsyncpa [#allocation4], 1 }
 0x154   :  { %354 = vsyncpa [#allocation4 + $0x1], 1 }

</bundles_post_ra>
